<compile_context>
chip_gen: v7x
topology: tpu7x:2x2x1
jax: 0.10.0
libtpu: 0.0.40
codegen_flags: <defaults>
</compile_context>

<pallas_src>
import functools
import math

import jax
import jax.numpy as jnp
from jax.experimental import pallas as pl
from jax.experimental.pallas import tpu as pltpu


# ----------------------------------------------------------------------------
# Kernel 1: patch embedding  --  patches (N, Kp) @ conv_w (Kp, D) + conv_b.
# Kept out of the encoder loop so the patch slab never sits in VMEM for L steps.
# ----------------------------------------------------------------------------
def patch_embed_kernel(patch_ref, cw_ref, cb_ref, out_ref):
    out_ref[...] = (
        jnp.dot(patch_ref[...], cw_ref[...], preferred_element_type=jnp.float32)
        + cb_ref[...]
    )


# ----------------------------------------------------------------------------
# Kernel 2: one grid step = one (sample, layer) pair of the transformer
# encoder.  grid = (B, L); the (S, D) f32 activation lives in the VMEM output
# block across the sequential layer axis.
# ----------------------------------------------------------------------------
def encoder_layer_kernel(
    emb_ref, pos_ref, wqk_ref, wv_ref, wo_ref, w1_ref, w2_ref, vec_ref, b1_ref,
    out_ref, *, nhead, eps=1e-5, approx_recip=True,
):
    layer = pl.program_id(1)
    S, D = out_ref.shape
    hd = D // nhead
    scale = 1.0 / math.sqrt(hd)

    # Layer 0: seed the resident activation with this sample's patch embedding.
    @pl.when(layer == 0)
    def _():
        out_ref[...] = emb_ref[...]

    src = out_ref[...]                     # (S, D) f32, resident across layers
    pos = pos_ref[...]                     # (S, D) f32

    wqk = wqk_ref[...]                     # (D, 2D)   [Wq | Wk]
    wv = wv_ref[...]                       # (D, D)
    wo = wo_ref[...]                       # (D, D)
    w1 = w1_ref[...]                       # (D, F)
    w2 = w2_ref[...]                       # (F, D)
    vec = vec_ref[...]                     # (9, D) packed bias / LN params
    bq, bk, bv = vec[0:1], vec[1:2], vec[2:3]
    bo, b2 = vec[3:4], vec[4:5]
    g1, be1, g2, be2 = vec[5:6], vec[6:7], vec[7:8], vec[8:9]
    b1 = b1_ref[...]                       # (1, F)

    cdt = wqk.dtype                        # matmul input dtype (bf16 or f32)

    # ---- self-attention:  q = k = src + pos,  v = src ------------------------
    qk_in = (src + pos).astype(cdt)
    qk = jnp.dot(qk_in, wqk, preferred_element_type=jnp.float32)        # (S, 2D)
    q = qk[:, :D] + bq
    k = qk[:, D:] + bk
    v = jnp.dot(src.astype(cdt), wv, preferred_element_type=jnp.float32) + bv

    # Per-head scores / softmax (softmax math kept in f32 — important on v5e).
    # Heads are a short static loop of 2-D MXU ops; normalization is applied
    # after the p @ V matmul (S*hd multiplies instead of S*S per head).
    ctx_heads = []
    for h in range(nhead):
        sl = slice(h * hd, (h + 1) * hd)
        qh, kh, vh = q[:, sl], k[:, sl], v[:, sl]
        s = jax.lax.dot_general(qh, kh, (((1,), (1,)), ((), ())),
                                preferred_element_type=jnp.float32)      # (S, S)
        s = s * scale
        s = s - jnp.max(s, axis=-1, keepdims=True)
        p = jnp.exp(s)
        denom = jnp.sum(p, axis=-1, keepdims=True)
        inv = pl.reciprocal(denom, approx=True) if approx_recip else 1.0 / denom
        ctx = jnp.dot(p, vh, preferred_element_type=jnp.float32) * inv   # (S, hd)
        ctx_heads.append(ctx)

    # Single D-deep output projection on the concatenated head contexts
    # (instead of nhead hd-deep contractions that underfill the MXU).
    ctx_all = jnp.concatenate(ctx_heads, axis=-1)                        # (S, D)
    attn = jnp.dot(ctx_all.astype(cdt), wo,
                   preferred_element_type=jnp.float32) + bo

    # ---- residual + LayerNorm 1 (f32) ----------------------------------------
    x = src + attn
    mu = jnp.mean(x, axis=-1, keepdims=True)
    xc = x - mu
    var = jnp.mean(xc * xc, axis=-1, keepdims=True)
    x = xc * jax.lax.rsqrt(var + eps) * g1 + be1

    # ---- FFN: linear2(relu(linear1(x))) ---------------------------------------
    h1 = jnp.dot(x.astype(cdt), w1, preferred_element_type=jnp.float32) + b1
    h1 = jnp.maximum(h1, 0.0)
    ff = jnp.dot(h1.astype(cdt), w2, preferred_element_type=jnp.float32) + b2

    # ---- residual + LayerNorm 2 (f32) -----------------------------------------
    y = x + ff
    mu2 = jnp.mean(y, axis=-1, keepdims=True)
    yc = y - mu2
    var2 = jnp.mean(yc * yc, axis=-1, keepdims=True)
    out_ref[...] = yc * jax.lax.rsqrt(var2 + eps) * g2 + be2


# ----------------------------------------------------------------------------
# Glue: patch extraction (matches conv2d(kernel=stride=p) flatten order).
# ----------------------------------------------------------------------------
def extract_patches(x, p):
    # x: (B, C, H, W) -> (B*num_patches, C*p*p); patch order row-major (i, j),
    # within-patch order (c, dy, dx).
    B, C, H, W = x.shape
    x = x.reshape(B, C, H // p, p, W // p, p)
    x = x.transpose(0, 2, 4, 1, 3, 5)
    return x.reshape(B * (H // p) * (W // p), C * p * p)


def _round_up(v, m):
    return (v + m - 1) // m * m


def _derive_vmem_limit(S, D, F, w_itemsize):
    # Per-step VMEM estimate: double-buffered per-layer weight slabs + packed
    # bias/LN vectors + resident emb/out blocks + main f32 intermediates
    # (qk, v, h1, per-head scores).  2x slack + compiler scratch, capped so it
    # stays safe under v7x's 64 MiB physical VMEM.
    weights = 2 * ((4 * D * D + 2 * D * F) * w_itemsize + (9 * D + F) * 4)
    acts = (6 * S * D + 2 * S * F + 2 * S * S) * 4
    est = 2 * (weights + acts) + (4 << 20)
    return int(min(max(est, 32 << 20), 56 << 20))


def source_encoder_forward(params, source_img, *, patch_size, nhead,
                           matmul_dtype=jnp.bfloat16, approx_recip=True):
    B, C, H, W = source_img.shape
    S = (H // patch_size) * (W // patch_size)      # num_patches (= seq length)
    K, D = params["conv_w"].shape
    L, _, F = params["w1"].shape
    N = B * S
    wdt = matmul_dtype

    # ---- patch embedding (own pallas_call; contraction dim padded to 256) ----
    Kp = _round_up(K, 256)
    patches = extract_patches(source_img, patch_size)
    patches = jnp.pad(patches, ((0, 0), (0, Kp - K))).astype(wdt)        # (N, Kp)
    conv_w = jnp.pad(params["conv_w"], ((0, Kp - K), (0, 0))).astype(wdt)
    emb = pl.pallas_call(
        patch_embed_kernel,
        out_shape=jax.ShapeDtypeStruct((N, D), jnp.float32),
    )(patches, conv_w, params["conv_b"])
    emb = emb.reshape(B, S, D)
    # For very large B*S, tile this GEMM over row blocks (second grid axis).

    pos = params["pos"][:, 0, :]                                          # (S, D)

    # ---- fused per-(sample, layer) encoder ------------------------------------
    def perlayer(shape):        # one layer's weight slab per grid step
        return pl.BlockSpec((None,) + shape, lambda b, l: (l, 0, 0))

    out = pl.pallas_call(
        functools.partial(encoder_layer_kernel, nhead=nhead,
                          approx_recip=approx_recip),
        out_shape=jax.ShapeDtypeStruct((B, S, D), jnp.float32),
        grid=(B, L),
        in_specs=[
            # patch embedding for sample b (read only at layer 0, small)
            pl.BlockSpec((None, S, D), lambda b, l: (b, 0, 0)),
            # pos embedding: constant index -> fetched once.  (For large
            # configs it can additionally be single-buffered with
            # pipeline_mode=pl.Buffered(1); negligible at this scale.)
            pl.BlockSpec((S, D), lambda b, l: (0, 0)),
            perlayer((D, 2 * D)),      # [Wq | Wk]
            perlayer((D, D)),          # Wv
            perlayer((D, D)),          # Wo
            perlayer((D, F)),          # W1
            perlayer((F, D)),          # W2
            perlayer((9, D)),          # packed [bq,bk,bv,bo,b2,g1,b1n,g2,b2n]
            perlayer((1, F)),          # b1 (ffn)
        ],
        out_specs=pl.BlockSpec((None, S, D), lambda b, l: (b, 0, 0)),
        compiler_params=pltpu.CompilerParams(
            dimension_semantics=("parallel", "arbitrary"),   # batch ∥, layers seq
            vmem_limit_bytes=_derive_vmem_limit(
                S, D, F, jnp.dtype(wdt).itemsize),
        ),
    )(emb, pos,
      params["w_qk"].astype(wdt), params["w_v"].astype(wdt),
      params["w_o"].astype(wdt), params["w1"].astype(wdt),
      params["w2"].astype(wdt), params["vecs"], params["b1"])

    # Back to the PyTorch nn.MultiheadAttention convention (S, B, D).
    return out.transpose(1, 0, 2)


# ----------------------------------------------------------------------------
# Deterministic parameter init (xavier-uniform for matrices, like the module).
# ----------------------------------------------------------------------------
def xavier_uniform(key, shape, fan_in, fan_out, dtype=jnp.float32):
    bound = math.sqrt(6.0 / (fan_in + fan_out))
    return jax.random.uniform(key, shape, dtype, minval=-bound, maxval=bound)


def init_source_encoder_params(key, *, in_chans, patch_size, d_model, nhead,
                               dim_feedforward, num_layers, num_patches):
    K = in_chans * patch_size * patch_size
    D, F, L = d_model, dim_feedforward, num_layers
    keys = jax.random.split(key, 2 + L)

    conv_w = xavier_uniform(keys[0], (K, D), K, D)
    conv_b = jnp.zeros((1, D), jnp.float32)
    pos = xavier_uniform(keys[1], (num_patches, 1, D), D, D)

    zeros_d = jnp.zeros((D,), jnp.float32)
    ones_d = jnp.ones((D,), jnp.float32)

    w_qk, w_v, w_o, w1s, w2s, vecs, b1s = [], [], [], [], [], [], []
    for l in range(L):
        lk = jax.random.split(keys[2 + l], 6)
        wq = xavier_uniform(lk[0], (D, D), D, D)
        wk = xavier_uniform(lk[1], (D, D), D, D)
        wv = xavier_uniform(lk[2], (D, D), D, D)
        wo = xavier_uniform(lk[3], (D, D), D, D)
        w1 = xavier_uniform(lk[4], (D, F), D, F)
        w2 = xavier_uniform(lk[5], (F, D), F, D)
        w_qk.append(jnp.concatenate([wq, wk], axis=1))
        w_v.append(wv); w_o.append(wo); w1s.append(w1); w2s.append(w2)
        # Packed per-layer vectors (row order must match the kernel unpacking):
        #   [bq, bk, bv, bo, b2, ln1_w, ln1_b, ln2_w, ln2_b]
        vecs.append(jnp.stack([zeros_d, zeros_d, zeros_d, zeros_d, zeros_d,
                               ones_d, zeros_d, ones_d, zeros_d], axis=0))
        b1s.append(jnp.zeros((1, F), jnp.float32))

    return dict(
        conv_w=conv_w, conv_b=conv_b, pos=pos,
        w_qk=jnp.stack(w_qk), w_v=jnp.stack(w_v), w_o=jnp.stack(w_o),
        w1=jnp.stack(w1s), w2=jnp.stack(w2s),
        vecs=jnp.stack(vecs), b1=jnp.stack(b1s))


# ----------------------------------------------------------------------------
if __name__ == "__main__":
    # Small config consistent with the module: img 16x16, patch 8 -> 4 patches
    # per image, 3 encoder layers (module default num_encoder_layers=3).
    B, C, IMG, P = 2, 3, 16, 8
    D_MODEL, NHEAD, FF, LAYERS = 32, 4, 64, 3
    NUM_PATCHES = (IMG // P) * (IMG // P)

    key = jax.random.PRNGKey(0)
    k_img, k_param = jax.random.split(key)
    source_img = jax.random.normal(k_img, (B, C, IMG, IMG), jnp.float32)

    params = init_source_encoder_params(
        k_param, in_chans=C, patch_size=P, d_model=D_MODEL, nhead=NHEAD,
        dim_feedforward=FF, num_layers=LAYERS, num_patches=NUM_PATCHES)

    fwd = jax.jit(functools.partial(source_encoder_forward,
                                    patch_size=P, nhead=NHEAD))
    out = jax.block_until_ready(fwd(params, source_img))
    assert out.shape == (NUM_PATCHES, B, D_MODEL)
    assert bool(jnp.all(jnp.isfinite(out)))
    print("KERNEL_OK")
</pallas_src>

<mosaic_0001>
module attributes {stable_mosaic.version = 11 : i64} {
  func.func @patch_embed_kernel(%arg0: memref<8x256xbf16, #tpu.memory_space<vmem>>, %arg1: memref<256x32xbf16, #tpu.memory_space<vmem>>, %arg2: memref<1x32xf32, #tpu.memory_space<vmem>>, %arg3: memref<8x32xf32, #tpu.memory_space<vmem>>) attributes {dimension_semantics = [], scalar_prefetch = 0 : i64, scratch_operands = 0 : i64, tpu.core_type = #tpu.core_type<tc>} {
    %c0 = arith.constant 0 : index
    %c0_0 = arith.constant 0 : index
    %0 = vector.load %arg0[%c0, %c0_0] : memref<8x256xbf16, #tpu.memory_space<vmem>>, vector<8x256xbf16>
    %c0_1 = arith.constant 0 : index
    %c0_2 = arith.constant 0 : index
    %1 = vector.load %arg1[%c0_1, %c0_2] : memref<256x32xbf16, #tpu.memory_space<vmem>>, vector<256x32xbf16>
    %cst = arith.constant dense<0.000000e+00> : vector<8x32xf32>
    %2 = tpu.matmul %0, %1, %cst {dimension_numbers = #tpu.dot_dimension_numbers<[1], [0], [0], [1], [0, 0, 1, 1], [], []>} : vector<8x256xbf16>, vector<256x32xbf16>, vector<8x32xf32> -> vector<8x32xf32>
    %c0_3 = arith.constant 0 : index
    %c0_4 = arith.constant 0 : index
    %3 = vector.load %arg2[%c0_3, %c0_4] : memref<1x32xf32, #tpu.memory_space<vmem>>, vector<1x32xf32>
    %4 = vector.broadcast %3 : vector<1x32xf32> to vector<8x32xf32>
    %5 = arith.addf %2, %4 : vector<8x32xf32>
    %c0_5 = arith.constant 0 : index
    %c0_6 = arith.constant 0 : index
    %6 = vector.load %arg3[%c0_5, %c0_6] : memref<8x32xf32, #tpu.memory_space<vmem>>, vector<8x32xf32>
    tpu.vector_store %arg3[%c0_5, %c0_6], %5 {strides = array<i32>} : memref<8x32xf32, #tpu.memory_space<vmem>>, vector<8x32xf32>,
    return
  }
}

module attributes {stable_mosaic.version = 11 : i64} {
  func.func @encoder_layer_kernel(%arg0: i32, %arg1: i32, %arg2: memref<1x4x32xf32, #tpu.memory_space<vmem>>, %arg3: memref<4x32xf32, #tpu.memory_space<vmem>>, %arg4: memref<1x32x64xbf16, #tpu.memory_space<vmem>>, %arg5: memref<1x32x32xbf16, #tpu.memory_space<vmem>>, %arg6: memref<1x32x32xbf16, #tpu.memory_space<vmem>>, %arg7: memref<1x32x64xbf16, #tpu.memory_space<vmem>>, %arg8: memref<1x64x32xbf16, #tpu.memory_space<vmem>>, %arg9: memref<1x9x32xf32, #tpu.memory_space<vmem>>, %arg10: memref<1x1x64xf32, #tpu.memory_space<vmem>>, %arg11: memref<1x4x32xf32, #tpu.memory_space<vmem>>) attributes {dimension_semantics = [#tpu.dimension_semantics<parallel>, #tpu.dimension_semantics<arbitrary>], iteration_bounds = array<i64: 2, 3>, scalar_prefetch = 0 : i64, scratch_operands = 0 : i64, tpu.core_type = #tpu.core_type<tc>, window_params = [{transform_indices = @transform_0, window_bounds = array<i64: 1, 4, 32>}, {pipeline_mode = #tpu.pipeline_mode<synchronous>, transform_indices = @transform_1, window_bounds = array<i64: 4, 32>}, {transform_indices = @transform_2, window_bounds = array<i64: 1, 32, 64>}, {transform_indices = @transform_3, window_bounds = array<i64: 1, 32, 32>}, {transform_indices = @transform_4, window_bounds = array<i64: 1, 32, 32>}, {transform_indices = @transform_5, window_bounds = array<i64: 1, 32, 64>}, {transform_indices = @transform_6, window_bounds = array<i64: 1, 64, 32>}, {transform_indices = @transform_7, window_bounds = array<i64: 1, 9, 32>}, {transform_indices = @transform_8, window_bounds = array<i64: 1, 1, 64>}, {transform_indices = @transform_9, window_bounds = array<i64: 1, 4, 32>}]} {
    %c0_i32 = arith.constant 0 : i32
    %0 = arith.cmpi eq, %arg1, %c0_i32 : i32
    %1 = arith.extui %0 : i1 to i32
    %c0_i32_0 = arith.constant 0 : i32
    %2 = arith.cmpi ne, %1, %c0_i32_0 : i32
    scf.if %2 {
      %c0_64 = arith.constant 0 : index
      %c0_65 = arith.constant 0 : index
      %c0_66 = arith.constant 0 : index
      %170 = vector.load %arg2[%c0_64, %c0_65, %c0_66] : memref<1x4x32xf32, #tpu.memory_space<vmem>>, vector<1x4x32xf32>
      %171 = vector.shape_cast %170 : vector<1x4x32xf32> to vector<4x32xf32>
      %c0_67 = arith.constant 0 : index
      %c0_68 = arith.constant 0 : index
      %c0_69 = arith.constant 0 : index
      %172 = vector.load %arg11[%c0_67, %c0_68, %c0_69] : memref<1x4x32xf32, #tpu.memory_space<vmem>>, vector<1x4x32xf32>
      %173 = vector.shape_cast %172 : vector<1x4x32xf32> to vector<4x32xf32>
      %174 = vector.shape_cast %171 : vector<4x32xf32> to vector<1x4x32xf32>
      tpu.vector_store %arg11[%c0_67, %c0_68, %c0_69], %174 {strides = array<i32>} : memref<1x4x32xf32, #tpu.memory_space<vmem>>, vector<1x4x32xf32>,
    } else {
    }
    %c0 = arith.constant 0 : index
    %c0_1 = arith.constant 0 : index
    %c0_2 = arith.constant 0 : index
    %3 = vector.load %arg11[%c0, %c0_1, %c0_2] : memref<1x4x32xf32, #tpu.memory_space<vmem>>, vector<1x4x32xf32>
    %4 = vector.shape_cast %3 : vector<1x4x32xf32> to vector<4x32xf32>
    %c0_3 = arith.constant 0 : index
    %c0_4 = arith.constant 0 : index
    %5 = vector.load %arg3[%c0_3, %c0_4] : memref<4x32xf32, #tpu.memory_space<vmem>>, vector<4x32xf32>
    %c0_5 = arith.constant 0 : index
    %c0_6 = arith.constant 0 : index
    %c0_7 = arith.constant 0 : index
    %6 = vector.load %arg4[%c0_5, %c0_6, %c0_7] : memref<1x32x64xbf16, #tpu.memory_space<vmem>>, vector<1x32x64xbf16>
    %7 = vector.shape_cast %6 : vector<1x32x64xbf16> to vector<32x64xbf16>
    %c0_8 = arith.constant 0 : index
    %c0_9 = arith.constant 0 : index
    %c0_10 = arith.constant 0 : index
    %8 = vector.load %arg5[%c0_8, %c0_9, %c0_10] : memref<1x32x32xbf16, #tpu.memory_space<vmem>>, vector<1x32x32xbf16>
    %9 = vector.shape_cast %8 : vector<1x32x32xbf16> to vector<32x32xbf16>
    %c0_11 = arith.constant 0 : index
    %c0_12 = arith.constant 0 : index
    %c0_13 = arith.constant 0 : index
    %10 = vector.load %arg6[%c0_11, %c0_12, %c0_13] : memref<1x32x32xbf16, #tpu.memory_space<vmem>>, vector<1x32x32xbf16>
    %11 = vector.shape_cast %10 : vector<1x32x32xbf16> to vector<32x32xbf16>
    %c0_14 = arith.constant 0 : index
    %c0_15 = arith.constant 0 : index
    %c0_16 = arith.constant 0 : index
    %12 = vector.load %arg7[%c0_14, %c0_15, %c0_16] : memref<1x32x64xbf16, #tpu.memory_space<vmem>>, vector<1x32x64xbf16>
    %13 = vector.shape_cast %12 : vector<1x32x64xbf16> to vector<32x64xbf16>
    %c0_17 = arith.constant 0 : index
    %c0_18 = arith.constant 0 : index
    %c0_19 = arith.constant 0 : index
    %14 = vector.load %arg8[%c0_17, %c0_18, %c0_19] : memref<1x64x32xbf16, #tpu.memory_space<vmem>>, vector<1x64x32xbf16>
    %15 = vector.shape_cast %14 : vector<1x64x32xbf16> to vector<64x32xbf16>
    %c0_20 = arith.constant 0 : index
    %c0_21 = arith.constant 0 : index
    %c0_22 = arith.constant 0 : index
    %16 = vector.load %arg9[%c0_20, %c0_21, %c0_22] : memref<1x9x32xf32, #tpu.memory_space<vmem>>, vector<1x9x32xf32>
    %17 = vector.shape_cast %16 : vector<1x9x32xf32> to vector<9x32xf32>
    %18 = vector.extract_strided_slice %17 {offsets = [0, 0], sizes = [1, 32], strides = [1, 1]} : vector<9x32xf32> to vector<1x32xf32>
    %19 = vector.extract_strided_slice %17 {offsets = [1, 0], sizes = [1, 32], strides = [1, 1]} : vector<9x32xf32> to vector<1x32xf32>
    %20 = vector.extract_strided_slice %17 {offsets = [2, 0], sizes = [1, 32], strides = [1, 1]} : vector<9x32xf32> to vector<1x32xf32>
    %21 = vector.extract_strided_slice %17 {offsets = [3, 0], sizes = [1, 32], strides = [1, 1]} : vector<9x32xf32> to vector<1x32xf32>
    %22 = vector.extract_strided_slice %17 {offsets = [4, 0], sizes = [1, 32], strides = [1, 1]} : vector<9x32xf32> to vector<1x32xf32>
    %23 = vector.extract_strided_slice %17 {offsets = [5, 0], sizes = [1, 32], strides = [1, 1]} : vector<9x32xf32> to vector<1x32xf32>
    %24 = vector.extract_strided_slice %17 {offsets = [6, 0], sizes = [1, 32], strides = [1, 1]} : vector<9x32xf32> to vector<1x32xf32>
    %25 = vector.extract_strided_slice %17 {offsets = [7, 0], sizes = [1, 32], strides = [1, 1]} : vector<9x32xf32> to vector<1x32xf32>
    %26 = vector.extract_strided_slice %17 {offsets = [8, 0], sizes = [1, 32], strides = [1, 1]} : vector<9x32xf32> to vector<1x32xf32>
    %c0_23 = arith.constant 0 : index
    %c0_24 = arith.constant 0 : index
    %c0_25 = arith.constant 0 : index
    %27 = vector.load %arg10[%c0_23, %c0_24, %c0_25] : memref<1x1x64xf32, #tpu.memory_space<vmem>>, vector<1x1x64xf32>
    %28 = vector.shape_cast %27 : vector<1x1x64xf32> to vector<1x64xf32>
    %29 = arith.addf %4, %5 : vector<4x32xf32>
    %30 = arith.truncf %29 : vector<4x32xf32> to vector<4x32xbf16>
    %cst = arith.constant dense<0.000000e+00> : vector<4x64xf32>
    %31 = tpu.matmul %30, %7, %cst {dimension_numbers = #tpu.dot_dimension_numbers<[1], [0], [0], [1], [0, 0, 1, 1], [], []>} : vector<4x32xbf16>, vector<32x64xbf16>, vector<4x64xf32> -> vector<4x64xf32>
    %32 = vector.extract_strided_slice %31 {offsets = [0, 0], sizes = [4, 32], strides = [1, 1]} : vector<4x64xf32> to vector<4x32xf32>
    %33 = vector.broadcast %18 : vector<1x32xf32> to vector<4x32xf32>
    %34 = arith.addf %32, %33 : vector<4x32xf32>
    %35 = vector.extract_strided_slice %31 {offsets = [0, 32], sizes = [4, 32], strides = [1, 1]} : vector<4x64xf32> to vector<4x32xf32>
    %36 = vector.broadcast %19 : vector<1x32xf32> to vector<4x32xf32>
    %37 = arith.addf %35, %36 : vector<4x32xf32>
    %38 = arith.truncf %4 : vector<4x32xf32> to vector<4x32xbf16>
    %cst_26 = arith.constant dense<0.000000e+00> : vector<4x32xf32>
    %39 = tpu.matmul %38, %9, %cst_26 {dimension_numbers = #tpu.dot_dimension_numbers<[1], [0], [0], [1], [0, 0, 1, 1], [], []>} : vector<4x32xbf16>, vector<32x32xbf16>, vector<4x32xf32> -> vector<4x32xf32>
    %40 = vector.broadcast %20 : vector<1x32xf32> to vector<4x32xf32>
    %41 = arith.addf %39, %40 : vector<4x32xf32>
    %42 = vector.extract_strided_slice %34 {offsets = [0, 0], sizes = [4, 8], strides = [1, 1]} : vector<4x32xf32> to vector<4x8xf32>
    %43 = vector.extract_strided_slice %37 {offsets = [0, 0], sizes = [4, 8], strides = [1, 1]} : vector<4x32xf32> to vector<4x8xf32>
    %44 = vector.extract_strided_slice %41 {offsets = [0, 0], sizes = [4, 8], strides = [1, 1]} : vector<4x32xf32> to vector<4x8xf32>
    %cst_27 = arith.constant dense<0.000000e+00> : vector<4x4xf32>
    %45 = tpu.matmul %42, %43, %cst_27 {dimension_numbers = #tpu.dot_dimension_numbers<[1], [1], [0], [0], [0, 0, 1, 0], [], []>} : vector<4x8xf32>, vector<4x8xf32>, vector<4x4xf32> -> vector<4x4xf32>
    %cst_28 = arith.constant 0.353553385 : f32
    %46 = vector.broadcast %cst_28 : f32 to vector<4x4xf32>
    %47 = arith.mulf %45, %46 : vector<4x4xf32>
    %cst_29 = arith.constant dense<0xFF800000> : vector<4xf32>
    %48 = vector.multi_reduction <maximumf>, %47, %cst_29 [1] : vector<4x4xf32> to vector<4xf32>
    %49 = vector.shape_cast %48 : vector<4xf32> to vector<4x1xf32>
    %50 = vector.broadcast %49 : vector<4x1xf32> to vector<4x4xf32>
    %51 = arith.subf %47, %50 : vector<4x4xf32>
    %52 = math.exp %51 : vector<4x4xf32>
    %cst_30 = arith.constant dense<0.000000e+00> : vector<4xf32>
    %53 = vector.multi_reduction <add>, %52, %cst_30 [1] : vector<4x4xf32> to vector<4xf32>
    %54 = vector.shape_cast %53 : vector<4xf32> to vector<4x1xf32>
    %55 = tpu.reciprocal %54 {approx = true} : vector<4x1xf32> -> vector<4x1xf32>
    %cst_31 = arith.constant dense<0.000000e+00> : vector<4x8xf32>
    %56 = tpu.matmul %52, %44, %cst_31 {dimension_numbers = #tpu.dot_dimension_numbers<[1], [0], [0], [1], [0, 0, 1, 1], [], []>} : vector<4x4xf32>, vector<4x8xf32>, vector<4x8xf32> -> vector<4x8xf32>
    %57 = vector.broadcast %55 : vector<4x1xf32> to vector<4x8xf32>
    %58 = arith.mulf %56, %57 : vector<4x8xf32>
    %59 = vector.extract_strided_slice %34 {offsets = [0, 8], sizes = [4, 8], strides = [1, 1]} : vector<4x32xf32> to vector<4x8xf32>
    %60 = vector.extract_strided_slice %37 {offsets = [0, 8], sizes = [4, 8], strides = [1, 1]} : vector<4x32xf32> to vector<4x8xf32>
    %61 = vector.extract_strided_slice %41 {offsets = [0, 8], sizes = [4, 8], strides = [1, 1]} : vector<4x32xf32> to vector<4x8xf32>
    %cst_32 = arith.constant dense<0.000000e+00> : vector<4x4xf32>
    %62 = tpu.matmul %59, %60, %cst_32 {dimension_numbers = #tpu.dot_dimension_numbers<[1], [1], [0], [0], [0, 0, 1, 0], [], []>} : vector<4x8xf32>, vector<4x8xf32>, vector<4x4xf32> -> vector<4x4xf32>
    %cst_33 = arith.constant 0.353553385 : f32
    %63 = vector.broadcast %cst_33 : f32 to vector<4x4xf32>
    %64 = arith.mulf %62, %63 : vector<4x4xf32>
    %cst_34 = arith.constant dense<0xFF800000> : vector<4xf32>
    %65 = vector.multi_reduction <maximumf>, %64, %cst_34 [1] : vector<4x4xf32> to vector<4xf32>
    %66 = vector.shape_cast %65 : vector<4xf32> to vector<4x1xf32>
    %67 = vector.broadcast %66 : vector<4x1xf32> to vector<4x4xf32>
    %68 = arith.subf %64, %67 : vector<4x4xf32>
    %69 = math.exp %68 : vector<4x4xf32>
    %cst_35 = arith.constant dense<0.000000e+00> : vector<4xf32>
    %70 = vector.multi_reduction <add>, %69, %cst_35 [1] : vector<4x4xf32> to vector<4xf32>
    %71 = vector.shape_cast %70 : vector<4xf32> to vector<4x1xf32>
    %72 = tpu.reciprocal %71 {approx = true} : vector<4x1xf32> -> vector<4x1xf32>
    %cst_36 = arith.constant dense<0.000000e+00> : vector<4x8xf32>
    %73 = tpu.matmul %69, %61, %cst_36 {dimension_numbers = #tpu.dot_dimension_numbers<[1], [0], [0], [1], [0, 0, 1, 1], [], []>} : vector<4x4xf32>, vector<4x8xf32>, vector<4x8xf32> -> vector<4x8xf32>
    %74 = vector.broadcast %72 : vector<4x1xf32> to vector<4x8xf32>
    %75 = arith.mulf %73, %74 : vector<4x8xf32>
    %76 = vector.extract_strided_slice %34 {offsets = [0, 16], sizes = [4, 8], strides = [1, 1]} : vector<4x32xf32> to vector<4x8xf32>
    %77 = vector.extract_strided_slice %37 {offsets = [0, 16], sizes = [4, 8], strides = [1, 1]} : vector<4x32xf32> to vector<4x8xf32>
    %78 = vector.extract_strided_slice %41 {offsets = [0, 16], sizes = [4, 8], strides = [1, 1]} : vector<4x32xf32> to vector<4x8xf32>
    %cst_37 = arith.constant dense<0.000000e+00> : vector<4x4xf32>
    %79 = tpu.matmul %76, %77, %cst_37 {dimension_numbers = #tpu.dot_dimension_numbers<[1], [1], [0], [0], [0, 0, 1, 0], [], []>} : vector<4x8xf32>, vector<4x8xf32>, vector<4x4xf32> -> vector<4x4xf32>
    %cst_38 = arith.constant 0.353553385 : f32
    %80 = vector.broadcast %cst_38 : f32 to vector<4x4xf32>
    %81 = arith.mulf %79, %80 : vector<4x4xf32>
    %cst_39 = arith.constant dense<0xFF800000> : vector<4xf32>
    %82 = vector.multi_reduction <maximumf>, %81, %cst_39 [1] : vector<4x4xf32> to vector<4xf32>
    %83 = vector.shape_cast %82 : vector<4xf32> to vector<4x1xf32>
    %84 = vector.broadcast %83 : vector<4x1xf32> to vector<4x4xf32>
    %85 = arith.subf %81, %84 : vector<4x4xf32>
    %86 = math.exp %85 : vector<4x4xf32>
    %cst_40 = arith.constant dense<0.000000e+00> : vector<4xf32>
    %87 = vector.multi_reduction <add>, %86, %cst_40 [1] : vector<4x4xf32> to vector<4xf32>
    %88 = vector.shape_cast %87 : vector<4xf32> to vector<4x1xf32>
    %89 = tpu.reciprocal %88 {approx = true} : vector<4x1xf32> -> vector<4x1xf32>
    %cst_41 = arith.constant dense<0.000000e+00> : vector<4x8xf32>
    %90 = tpu.matmul %86, %78, %cst_41 {dimension_numbers = #tpu.dot_dimension_numbers<[1], [0], [0], [1], [0, 0, 1, 1], [], []>} : vector<4x4xf32>, vector<4x8xf32>, vector<4x8xf32> -> vector<4x8xf32>
    %91 = vector.broadcast %89 : vector<4x1xf32> to vector<4x8xf32>
    %92 = arith.mulf %90, %91 : vector<4x8xf32>
    %93 = vector.extract_strided_slice %34 {offsets = [0, 24], sizes = [4, 8], strides = [1, 1]} : vector<4x32xf32> to vector<4x8xf32>
    %94 = vector.extract_strided_slice %37 {offsets = [0, 24], sizes = [4, 8], strides = [1, 1]} : vector<4x32xf32> to vector<4x8xf32>
    %95 = vector.extract_strided_slice %41 {offsets = [0, 24], sizes = [4, 8], strides = [1, 1]} : vector<4x32xf32> to vector<4x8xf32>
    %cst_42 = arith.constant dense<0.000000e+00> : vector<4x4xf32>
    %96 = tpu.matmul %93, %94, %cst_42 {dimension_numbers = #tpu.dot_dimension_numbers<[1], [1], [0], [0], [0, 0, 1, 0], [], []>} : vector<4x8xf32>, vector<4x8xf32>, vector<4x4xf32> -> vector<4x4xf32>
    %cst_43 = arith.constant 0.353553385 : f32
    %97 = vector.broadcast %cst_43 : f32 to vector<4x4xf32>
    %98 = arith.mulf %96, %97 : vector<4x4xf32>
    %cst_44 = arith.constant dense<0xFF800000> : vector<4xf32>
    %99 = vector.multi_reduction <maximumf>, %98, %cst_44 [1] : vector<4x4xf32> to vector<4xf32>
    %100 = vector.shape_cast %99 : vector<4xf32> to vector<4x1xf32>
    %101 = vector.broadcast %100 : vector<4x1xf32> to vector<4x4xf32>
    %102 = arith.subf %98, %101 : vector<4x4xf32>
    %103 = math.exp %102 : vector<4x4xf32>
    %cst_45 = arith.constant dense<0.000000e+00> : vector<4xf32>
    %104 = vector.multi_reduction <add>, %103, %cst_45 [1] : vector<4x4xf32> to vector<4xf32>
    %105 = vector.shape_cast %104 : vector<4xf32> to vector<4x1xf32>
    %106 = tpu.reciprocal %105 {approx = true} : vector<4x1xf32> -> vector<4x1xf32>
    %cst_46 = arith.constant dense<0.000000e+00> : vector<4x8xf32>
    %107 = tpu.matmul %103, %95, %cst_46 {dimension_numbers = #tpu.dot_dimension_numbers<[1], [0], [0], [1], [0, 0, 1, 1], [], []>} : vector<4x4xf32>, vector<4x8xf32>, vector<4x8xf32> -> vector<4x8xf32>
    %108 = vector.broadcast %106 : vector<4x1xf32> to vector<4x8xf32>
    %109 = arith.mulf %107, %108 : vector<4x8xf32>
    %110 = tpu.concatenate %58, %75, %92, %109 in 1 : vector<4x8xf32>, vector<4x8xf32>, vector<4x8xf32>, vector<4x8xf32> -> vector<4x32xf32>
    %111 = arith.truncf %110 : vector<4x32xf32> to vector<4x32xbf16>
    %cst_47 = arith.constant dense<0.000000e+00> : vector<4x32xf32>
    %112 = tpu.matmul %111, %11, %cst_47 {dimension_numbers = #tpu.dot_dimension_numbers<[1], [0], [0], [1], [0, 0, 1, 1], [], []>} : vector<4x32xbf16>, vector<32x32xbf16>, vector<4x32xf32> -> vector<4x32xf32>
    %113 = vector.broadcast %21 : vector<1x32xf32> to vector<4x32xf32>
    %114 = arith.addf %112, %113 : vector<4x32xf32>
    %115 = arith.addf %4, %114 : vector<4x32xf32>
    %cst_48 = arith.constant dense<0.000000e+00> : vector<4xf32>
    %116 = vector.multi_reduction <add>, %115, %cst_48 [1] : vector<4x32xf32> to vector<4xf32>
    %117 = vector.shape_cast %116 : vector<4xf32> to vector<4x1xf32>
    %cst_49 = arith.constant 3.200000e+01 : f32
    %118 = vector.broadcast %cst_49 : f32 to vector<4x1xf32>
    %119 = arith.divf %117, %118 : vector<4x1xf32>
    %120 = vector.broadcast %119 : vector<4x1xf32> to vector<4x32xf32>
    %121 = arith.subf %115, %120 : vector<4x32xf32>
    %122 = arith.mulf %121, %121 : vector<4x32xf32>
    %cst_50 = arith.constant dense<0.000000e+00> : vector<4xf32>
    %123 = vector.multi_reduction <add>, %122, %cst_50 [1] : vector<4x32xf32> to vector<4xf32>
    %124 = vector.shape_cast %123 : vector<4xf32> to vector<4x1xf32>
    %cst_51 = arith.constant 3.200000e+01 : f32
    %125 = vector.broadcast %cst_51 : f32 to vector<4x1xf32>
    %126 = arith.divf %124, %125 : vector<4x1xf32>
    %cst_52 = arith.constant 9.99999974E-6 : f32
    %127 = vector.broadcast %cst_52 : f32 to vector<4x1xf32>
    %128 = arith.addf %126, %127 : vector<4x1xf32>
    %129 = math.rsqrt %128 : vector<4x1xf32>
    %130 = vector.broadcast %129 : vector<4x1xf32> to vector<4x32xf32>
    %131 = arith.mulf %121, %130 : vector<4x32xf32>
    %132 = vector.broadcast %23 : vector<1x32xf32> to vector<4x32xf32>
    %133 = arith.mulf %131, %132 : vector<4x32xf32>
    %134 = vector.broadcast %24 : vector<1x32xf32> to vector<4x32xf32>
    %135 = arith.addf %133, %134 : vector<4x32xf32>
    %136 = arith.truncf %135 : vector<4x32xf32> to vector<4x32xbf16>
    %cst_53 = arith.constant dense<0.000000e+00> : vector<4x64xf32>
    %137 = tpu.matmul %136, %13, %cst_53 {dimension_numbers = #tpu.dot_dimension_numbers<[1], [0], [0], [1], [0, 0, 1, 1], [], []>} : vector<4x32xbf16>, vector<32x64xbf16>, vector<4x64xf32> -> vector<4x64xf32>
    %138 = vector.broadcast %28 : vector<1x64xf32> to vector<4x64xf32>
    %139 = arith.addf %137, %138 : vector<4x64xf32>
    %cst_54 = arith.constant 0.000000e+00 : f32
    %140 = vector.broadcast %cst_54 : f32 to vector<4x64xf32>
    %141 = arith.maximumf %139, %140 : vector<4x64xf32>
    %142 = arith.truncf %141 : vector<4x64xf32> to vector<4x64xbf16>
    %cst_55 = arith.constant dense<0.000000e+00> : vector<4x32xf32>
    %143 = tpu.matmul %142, %15, %cst_55 {dimension_numbers = #tpu.dot_dimension_numbers<[1], [0], [0], [1], [0, 0, 1, 1], [], []>} : vector<4x64xbf16>, vector<64x32xbf16>, vector<4x32xf32> -> vector<4x32xf32>
    %144 = vector.broadcast %22 : vector<1x32xf32> to vector<4x32xf32>
    %145 = arith.addf %143, %144 : vector<4x32xf32>
    %146 = arith.addf %135, %145 : vector<4x32xf32>
    %cst_56 = arith.constant dense<0.000000e+00> : vector<4xf32>
    %147 = vector.multi_reduction <add>, %146, %cst_56 [1] : vector<4x32xf32> to vector<4xf32>
    %148 = vector.shape_cast %147 : vector<4xf32> to vector<4x1xf32>
    %cst_57 = arith.constant 3.200000e+01 : f32
    %149 = vector.broadcast %cst_57 : f32 to vector<4x1xf32>
    %150 = arith.divf %148, %149 : vector<4x1xf32>
    %151 = vector.broadcast %150 : vector<4x1xf32> to vector<4x32xf32>
    %152 = arith.subf %146, %151 : vector<4x32xf32>
    %153 = arith.mulf %152, %152 : vector<4x32xf32>
    %cst_58 = arith.constant dense<0.000000e+00> : vector<4xf32>
    %154 = vector.multi_reduction <add>, %153, %cst_58 [1] : vector<4x32xf32> to vector<4xf32>
    %155 = vector.shape_cast %154 : vector<4xf32> to vector<4x1xf32>
    %cst_59 = arith.constant 3.200000e+01 : f32
    %156 = vector.broadcast %cst_59 : f32 to vector<4x1xf32>
    %157 = arith.divf %155, %156 : vector<4x1xf32>
    %cst_60 = arith.constant 9.99999974E-6 : f32
    %158 = vector.broadcast %cst_60 : f32 to vector<4x1xf32>
    %159 = arith.addf %157, %158 : vector<4x1xf32>
    %160 = math.rsqrt %159 : vector<4x1xf32>
    %161 = vector.broadcast %160 : vector<4x1xf32> to vector<4x32xf32>
    %162 = arith.mulf %152, %161 : vector<4x32xf32>
    %163 = vector.broadcast %25 : vector<1x32xf32> to vector<4x32xf32>
    %164 = arith.mulf %162, %163 : vector<4x32xf32>
    %165 = vector.broadcast %26 : vector<1x32xf32> to vector<4x32xf32>
    %166 = arith.addf %164, %165 : vector<4x32xf32>
    %c0_61 = arith.constant 0 : index
    %c0_62 = arith.constant 0 : index
    %c0_63 = arith.constant 0 : index
    %167 = vector.load %arg11[%c0_61, %c0_62, %c0_63] : memref<1x4x32xf32, #tpu.memory_space<vmem>>, vector<1x4x32xf32>
    %168 = vector.shape_cast %167 : vector<1x4x32xf32> to vector<4x32xf32>
    %169 = vector.shape_cast %166 : vector<4x32xf32> to vector<1x4x32xf32>
    tpu.vector_store %arg11[%c0_61, %c0_62, %c0_63], %169 {strides = array<i32>} : memref<1x4x32xf32, #tpu.memory_space<vmem>>, vector<1x4x32xf32>,
    return
  }
  func.func @transform_0(%arg0: i32, %arg1: i32) -> (i32, i32, i32) {
    %c0_i32 = arith.constant 0 : i32
    %c0_i32_0 = arith.constant 0 : i32
    %c0_i32_1 = arith.constant 0 : i32
    return %arg0, %c0_i32, %c0_i32_0 : i32, i32, i32
  }
  func.func @transform_1(%arg0: i32, %arg1: i32) -> (i32, i32) {
    %c0_i32 = arith.constant 0 : i32
    %c0_i32_0 = arith.constant 0 : i32
    %c0_i32_1 = arith.constant 0 : i32
    return %c0_i32, %c0_i32_0 : i32, i32
  }
  func.func @transform_2(%arg0: i32, %arg1: i32) -> (i32, i32, i32) {
    %c0_i32 = arith.constant 0 : i32
    %c0_i32_0 = arith.constant 0 : i32
    %c0_i32_1 = arith.constant 0 : i32
    return %arg1, %c0_i32, %c0_i32_0 : i32, i32, i32
  }
  func.func @transform_3(%arg0: i32, %arg1: i32) -> (i32, i32, i32) {
    %c0_i32 = arith.constant 0 : i32
    %c0_i32_0 = arith.constant 0 : i32
    %c0_i32_1 = arith.constant 0 : i32
    return %arg1, %c0_i32, %c0_i32_0 : i32, i32, i32
  }
  func.func @transform_4(%arg0: i32, %arg1: i32) -> (i32, i32, i32) {
    %c0_i32 = arith.constant 0 : i32
    %c0_i32_0 = arith.constant 0 : i32
    %c0_i32_1 = arith.constant 0 : i32
    return %arg1, %c0_i32, %c0_i32_0 : i32, i32, i32
  }
  func.func @transform_5(%arg0: i32, %arg1: i32) -> (i32, i32, i32) {
    %c0_i32 = arith.constant 0 : i32
    %c0_i32_0 = arith.constant 0 : i32
    %c0_i32_1 = arith.constant 0 : i32
    return %arg1, %c0_i32, %c0_i32_0 : i32, i32, i32
  }
  func.func @transform_6(%arg0: i32, %arg1: i32) -> (i32, i32, i32) {
    %c0_i32 = arith.constant 0 : i32
    %c0_i32_0 = arith.constant 0 : i32
    %c0_i32_1 = arith.constant 0 : i32
    return %arg1, %c0_i32, %c0_i32_0 : i32, i32, i32
  }
  func.func @transform_7(%arg0: i32, %arg1: i32) -> (i32, i32, i32) {
    %c0_i32 = arith.constant 0 : i32
    %c0_i32_0 = arith.constant 0 : i32
    %c0_i32_1 = arith.constant 0 : i32
    return %arg1, %c0_i32, %c0_i32_0 : i32, i32, i32
  }
  func.func @transform_8(%arg0: i32, %arg1: i32) -> (i32, i32, i32) {
    %c0_i32 = arith.constant 0 : i32
    %c0_i32_0 = arith.constant 0 : i32
    %c0_i32_1 = arith.constant 0 : i32
    return %arg1, %c0_i32, %c0_i32_0 : i32, i32, i32
  }
  func.func @transform_9(%arg0: i32, %arg1: i32) -> (i32, i32, i32) {
    %c0_i32 = arith.constant 0 : i32
    %c0_i32_0 = arith.constant 0 : i32
    %c0_i32_1 = arith.constant 0 : i32
    return %arg0, %c0_i32, %c0_i32_0 : i32, i32, i32
  }
}

</mosaic_0001>

<bundles_post_ra>
// kernel: source_encoder_forward.2
= control target key start
LH: loop header
LB: loop body
LE: loop exit
PB: predicated region body
PF: predicated region fallthrough
CT: control target
= control target key end

     0   :  { %vm198_vm0 = vcmask 261120   ;;  %s340_s1 = inlined_call_operand.vmem [shape: bf16[256,32], index: 1, kind: input, shape index: {}]   ;;  %s341_s0 = inlined_call_operand.vmem [shape: bf16[8,256], index: 0, kind: input, shape index: {}]   ;;  %s342_s2 = inlined_call_operand.vmem [shape: f32[1,32], index: 2, kind: input, shape index: {}]   ;;  %s343_s3 = inlined_call_operand.vmem [shape: f32[8,32], index: 3, kind: output, shape index: {}]  }
   0x1   :  { %v245_v0 = vld [vmem:[%s340_s1 + $0x40] sm:$0xff]   ;;  %v247_v2 = vld [vmem:[%s340_s1 + $0x48] sm:$0xff]   ;;  %v249_v4 = vld [vmem:[%s340_s1 + $0x50] sm:$0xff]  }
   0x2   :  { %v246_v1 = vld [vmem:[%s340_s1] sm:$0xff]   ;;  %223 = vmatprep.subr.bf16.mxu0 %v245_v0  ;;  %v248_v3 = vld [vmem:[%s340_s1 + $0x8] sm:$0xff]   ;;  %v250_v5 = vld [vmem:[%s340_s1 + $0x10] sm:$0xff]  }
   0x3   :  { %224 = vmatpush3.bf16.msra.mxu0 %v246_v1  ;;  %v251_v6 = vld [vmem:[%s340_s1 + $0x58] sm:$0xff]   ;;  %v253_v8 = vld [vmem:[%s340_s1 + $0x60] sm:$0xff]   ;;  %v255_v10 = vld [vmem:[%s340_s1 + $0x68] sm:$0xff]  }
   0x4   :  { %225 = vmatprep.subr.bf16.mxu0 %v247_v2  ;;  %v252_v7 = vld [vmem:[%s340_s1 + $0x18] sm:$0xff]   ;;  %v254_v9 = vld [vmem:[%s340_s1 + $0x20] sm:$0xff]   ;;  %v256_v13 = vld [vmem:[%s340_s1 + $0x28] sm:$0xff]  }
   0x5   :  { %v15_v11 = vld [vmem:[%s341_s0] sm:$0xff]  ;;  %v257_v14 = vld [vmem:[%s340_s1 + $0x70] sm:$0xff]   ;;  %v259_v16 = vld [vmem:[%s340_s1 + $0x78] sm:$0xff]  }
   0x6   :  { %v206_v12 = vcombine.high %v15_v11, %v15_v11  ;;  %v258_v15 = vld [vmem:[%s340_s1 + $0x30] sm:$0xff]   ;;  %v260_v17 = vld [vmem:[%s340_s1 + $0x38] sm:$0xff]   ;;  %v205_v18 = vcombine.low %v15_v11, %v15_v11  ;;  %v204_v20 = vld [vmem:[%s342_s2] ss:$0 sm:$0xff] }
   0x7   :  { %226 = vmatpush3.bf16.msra.mxu0 %v248_v3 }
   0x8   :  { %227 = vmatprep.subr.bf16.mxu0 %v249_v4  ;;  %190 = vmatprep.mubr.bf16.mxu0 %v206_v12 }
   0xb   :  { %228 = vmatpush3.bf16.msra.mxu0 %v250_v5 }
   0xc   :  { %229 = vmatprep.subr.bf16.mxu0 %v251_v6 }
   0xf   :  { %230 = vmatpush3.bf16.msra.mxu0 %v252_v7 }
  0x10   :  { %231 = vmatprep.subr.bf16.mxu0 %v253_v8 }
  0x13   :  { %232 = vmatpush3.bf16.msra.mxu0 %v254_v9 }
  0x14   :  { %233 = vmatprep.subr.bf16.mxu0 %v255_v10 }
  0x17   :  { %234 = vmatpush3.bf16.msra.mxu0 %v256_v13 }
  0x18   :  { %235 = vmatprep.subr.bf16.mxu0 %v257_v14 }
  0x1b   :  { %236 = vmatpush3.bf16.msra.mxu0 %v258_v15 }
  0x1c   :  { %237 = vmatprep.subr.bf16.mxu0 %v259_v16 }
  0x1f   :  { %238 = vmatpush3.bf16.msra.mxu0 %v260_v17 }
  0x22   :  { %191 = vmatmul.mubr.bf16.vlgmr.msra.gmra.mrb[0].mxu0 %v205_v18 }
  0xf5   :  { %v239_v19 = vpop.f32.mrb[0].mxu0 }
  0xf6   :  { %v240_v21 = vpop.f32.mrb[1].mxu0 }
  0xf7   :  { %v241_v22 = vadd.f32 %v240_v21, %v239_v19  ;;  %v242_v23 = vpop.f32.mrb[2].mxu0 }
  0xf8   :  { %v243_v24 = vpop.f32.mrb[3].mxu0 }
  0xf9   :  { %v193_v25 = vadd.f32 %v241_v22, %v204_v20 }
  0xfb   :  { %199 = vst.msk [vmem:[%s343_s3] sm:$0xff] %vm198_vm0, %v193_v25 }

// kernel: source_encoder_forward.3
= control target key start
LH: loop header
LB: loop body
LE: loop exit
PB: predicated region body
PF: predicated region fallthrough
CT: control target
= control target key end

     0   :  { %s2091_s30 = smov 0   ;;  %s2093_s10 = smov 0   ;;  %s2318_s0 = inlined_call_operand.vmem [shape: f32[2,4,32], index: 0, kind: input, shape index: {}]   ;;  %s2319_s1 = inlined_call_operand.vmem [shape: f32[4,32], index: 1, kind: input, shape index: {}]   ;;  %s2320_s2 = inlined_call_operand.vmem [shape: bf16[3,32,64], index: 2, kind: input, shape index: {}]   ;;  %s2321_s3 = inlined_call_operand.vmem [shape: bf16[3,32,32], index: 3, kind: input, shape index: {}]   ;;  %s2322_s4 = inlined_call_operand.vmem [shape: bf16[3,32,32], index: 4, kind: input, shape index: {}]   ;;  %s2323_s5 = inlined_call_operand.vmem [shape: bf16[3,32,64], index: 5, kind: input, shape index: {}]   ;;  %s2324_s6 = inlined_call_operand.vmem [shape: bf16[3,64,32], index: 6, kind: input, shape index: {}]   ;;  %s2325_s7 = inlined_call_operand.vmem [shape: f32[3,9,32], index: 7, kind: input, shape index: {}]   ;;  %s2326_s8 = inlined_call_operand.vmem [shape: f32[3,1,64], index: 8, kind: input, shape index: {}]   ;;  %s2327_s9 = inlined_call_operand.vmem [shape: f32[2,4,32], index: 9, kind: output, shape index: {}]  }
   0x1   :  { %2329 = sst [smem:[#allocation5_spill]] %s2318_s0  ;;  %s2095_s11 = smov 0  }
   0x2   :  { %2330 = sst [smem:[#allocation6_spill]] %s2320_s2  ;;  %s2097_s12 = smov 0  }
   0x3   :  { %2331 = sst [smem:[#allocation7_spill]] %s2321_s3  ;;  %s2099_s13 = smov 0  }
   0x4   :  { %2332 = sst [smem:[#allocation8_spill]] %s2322_s4 }
   0x5 LB: > { %2333 = sst [smem:[#allocation2_spill]] %s2022_s12  ;;  %s28_s14 = sadd.s32 1, %s2018_s11  ;;  %s2026_s13 = sphi %s2099_s13, %s19_s13   ;;  %s2022_s12 = sphi %s2097_s12, %s2342_s12   ;;  %s2018_s11 = sphi %s2095_s11, %s2344_s11   ;;  %s2014_s10 = sphi %s2093_s10, %s2340_s10   ;;  %s2010_s30 = sphi %s2091_s30, %s2343_s30  }
   0x6   : > { %s31_s15 = sadd.s32 1, %s2022_s12  ;;  %p29_p0 = scmp.ge.s32.totalorder %s28_s14, 3 }
   0x7   : > { %p1727_p1 = scmp.ge.s32.totalorder %s2026_s13, 1  ;;  %p366_p2 = scmp.lt.s32.totalorder %s2026_s13, 7 }
   0x8   : > { %s2346_s14 = smov (%p29_p0, %s28_s14), 0  ;;  %s2348_s15 = smov (!%p29_p0, %s31_s15), %s2022_s12 }
   0x9   : > { %2334 = sst [smem:[#allocation3_spill]] %s2346_s14  ;;  %p367_p3 = pnand %p1727_p1, %p366_p2 }
   0xa   : > { %p33_p4 = scmp.ge.s32.totalorder %s2348_s15, 2  ;;  %p433_p5 = scmp.lt.s32.totalorder (!%p367_p3), %s2014_s10, 1 }
   0xb   : > { %370 = sbr.rel (%p367_p3) target bundleno = 2366 (0x93e), region = 56  ;;  %p437_p6 = scmp.lt.s32.totalorder (!%p367_p3), %s2010_s30, 2 }
   0xc   : > { %s2350_s15 = smov (%p33_p4, %s2348_s15), 0  ;;  %s2336_s0 = sld [smem:[#allocation5_spill]] (!%p367_p3) }
   0xd   : > { %2335 = sst [smem:[#allocation4_spill]] %s2350_s15  ;;  %s2337_s2 = sld [smem:[#allocation6_spill]] (!%p367_p3) }
   0xe   : > { %s2338_s3 = sld [smem:[#allocation7_spill]] (!%p367_p3)  ;;  %s2339_s4 = sld [smem:[#allocation8_spill]] (!%p367_p3) }
   0xf   : > { %p1742_p7 = scmp.ne.s32.totalorder (!%p367_p3), %s2010_s30, 0 }
  0x12   : > { %s2352_s10 = smov (!%p433_p5, %s2014_s10), 1  ;;  %vm480_vm0 = vcmask (!%p1742_p7), 257024  }
  0x13   : > { %s2125_s16 = scalar_select %p437_p6, %s2010_s30, 2 }
  0x14   : > { %s1728_s17 = sshll.u32 %s2352_s10, 2  ;;  %478 = sbr.rel (%p1742_p7) target bundleno = 28 (0x1c), region = 60 }
  0x15   : > { %s436_s20 = scalar_lea.vmem %s2336_s0, %s1728_s17  ;;  %s1780_s21 = sshll.u32 %s2125_s16, 4 }
  0x16   : > { %s441_s24 = scalar_lea.vmem %s2337_s2, %s1780_s21  ;;  %s2137_s27 = scalar_lea.vmem %s2338_s3, %s1780_s21  ;;  %v479_v0 = vld [vmem:[%s436_s20] sm:$0xf] (!%p1742_p7) }
  0x17   : > { %s2142_s15 = scalar_lea.vmem %s2339_s4, %s1780_s21  ;;  %s2147_s18 = scalar_lea.vmem %s2323_s5, %s1780_s21 }
  0x18   : > { %s1784_s19 = sshll.u32 %s2125_s16, 5  ;;  %s2153_s22 = scalar_lea.vmem %s2325_s7, %s1780_s21 }
  0x19   : > { %s2158_s26 = scalar_lea.vmem %s2324_s6, %s1784_s19  ;;  %s469_s29 = scalar_lea.vmem %s2326_s8, %s2125_s16 }
  0x1a   : > { %s2167_s14 = scalar_lea.vmem %s2327_s9, %s1728_s17 }
  0x1b   : > { %481 = vst.msk [vmem:[%s2167_s14] sm:$0xf] %vm480_vm0, %v479_v0 }
  0x1c PF: > { %v1956_v1 = vld [vmem:[%s441_s24] sm:$0xff]   ;;  %v569_v2 = vlaneseq  ;;  %v2028_v3 = vmov 0.0   ;;  %v1957_v4 = vld [vmem:[%s441_s24 + $0x8] sm:$0xff]   ;;  %vm2029_vm1 = vmmov 0   ;;  %vm525_vm2 = vcmask 261120   ;;  %s2030_s3 = smov 32  }
  0x1d   : > { %1819 = vmatprep.subr.bf16.mxu1 %v2028_v3  ;;  %1835 = vmatprep.subr.mxu0 %v2028_v3  ;;  %v483_v6 = vld [vmem:[%s2319_s1] sm:$0xf]  ;;  %v1959_v14 = vld [vmem:[%s2137_s27 + $0x8] sm:$0xff]   ;;  %s2031_s4 = smov 88   ;;  %s2032_s30 = smov 96   ;;  %vm738_vm3 = vcmask 1043456  }
  0x1e   : > { %1820 = vmatpush3.bf16.msra.mxu1 %v1956_v1  ;;  %1823 = vmatprep.mubr.msk.bf16.mxu1 %vm2029_vm1, %v2028_v3  ;;  %v2184_v8 = vld [vmem:[%s2153_s22] sm:$0xff]  ;;  %v2186_v9 = vshrl.u32 %v569_v2, 7  ;;  %s2033_s12 = smov 80   ;;  %s2034_s17 = smov 120   ;;  %vm646_vm4 = vcmask 64512   ;;  %vm723_vm5 = vcmask 27648  }
  0x1f   : > { %1821 = vmatprep.subr.bf16.mxu1 %v2028_v3  ;;  %1837 = vmatprep.mubr.msk.f32.mxu0 %vm2029_vm1, %v2028_v3  ;;  %v1958_v13 = vld [vmem:[%s2137_s27] sm:$0xff]   ;;  %s2035_s20 = smov 72   ;;  %s2036_s21 = smov 112   ;;  %vm734_vm6 = vcmask 31744   ;;  %vm1327_vm7 = vcmask 130048   ;;  %vm1329_vm8 = vcmask 195584  }
  0x20   : > { %v576_v11 = vsub.s32 1, %v2186_v9  ;;  %v571_v16 = vsub.s32 0, %v2186_v9  ;;  %s2037_s24 = smov 104   ;;  %v586_v25 = vsub.s32 2, %v2186_v9  ;;  %s2038_s27 = smov 8   ;;  %vm1392_vm9 = vcmask 257024  }
  0x21   : > { %s2039_s10 = smov 16   ;;  %vm1509_vm10 = vcmask 523264  }
  0x22   : > { %v2176_v5 = vld [vmem:[%s2167_s14] sm:$0xf]  ;;  %1822 = vmatpush3.bf16.msra.mxu1 %v1957_v4  ;;  %v577_v12 = vrot.slane %v2184_v8, %v576_v11  ;;  %v572_v19 = vrot.slane %v2184_v8, %v571_v16  ;;  %v587_v26 = vrot.slane %v2184_v8, %v586_v25 }
  0x23   : > { %v511_v7 = vadd.f32 %v483_v6, %v2176_v5  ;;  %1827 = vmatprep.subr.bf16.mxu1 %v2028_v3  ;;  %v583_v15 = vpack.c.bf16 %v2176_v5, %v2176_v5 }
  0x24   : > { %579 = vrot.lane.b32.xlu0 %v577_v12, %s2030_s3 }
  0x25   : > { %v512_v10 = vpack.c.bf16 %v511_v7, %v511_v7 }
  0x27   : > { %1824 = vmatmul.mubr.msk.bf16.vlgmr.msra.gmra.mrb[0].mxu1 %vm525_vm2, %v512_v10 }
  0x28   : > { %1831 = vmatprep.mubr.msk.bf16.mxu1 %vm2029_vm1, %v2028_v3  ;;  %1828 = vmatpush3.bf16.msra.mxu1 %v1958_v13 }
  0x29   : > { %1829 = vmatprep.subr.bf16.mxu1 %v2028_v3 }
  0x2c   : > { %1830 = vmatpush3.bf16.msra.mxu1 %v1959_v14 }
  0x2d   : > { %1840 = vmatprep.subr.mxu1 %v2028_v3 }
  0x2f   : > { %1832 = vmatmul.mubr.msk.bf16.vlgmr.msra.gmra.mrb[4].mxu1 %vm525_vm2, %v583_v15 }
  0x30   : > { %1842 = vmatprep.mubr.msk.f32.mxu1 %vm2029_vm1, %v2028_v3 }
  0x96   : > { %v580_v17 = vpop.permute.xlu0 %579 }
  0xfa   : > { %v563_v18 = vpop.f32.mrb[0].mxu1 }
  0xfb   : > { %v582_v20 = vadd.f32 %v580_v17, %v563_v18  ;;  %v1825_v21 = vpop.f32.mrb[1].mxu1  ;;  %v573_v24 = vadd.f32 %v572_v19, %v563_v18 }
  0xfc   : > { %v566_v22 = vpop.f32.mrb[2].mxu1 }
  0xfd   : > { %815 = vrot.lane.b32.xlu1 %v582_v20, %s2031_s4  ;;  %644 = vrot.lane.b32.xlu0 %v582_v20, %s2032_s30  ;;  %v1826_v23 = vpop.f32.mrb[3].mxu1 }
 0x101   : > { %982 = vrot.lane.b32.xlu0 %v582_v20, %s2033_s12  ;;  %813 = vrot.lane.b32.xlu1 %v573_v24, %s2034_s17 }
 0x102   : > { %v637_v27 = vpop.f32.mrb[4].mxu1 }
 0x103   : > { %v638_v28 = vadd.f32 %v637_v27, %v587_v26  ;;  %v1833_v29 = vpop.f32.mrb[5].mxu1 }
 0x104   : > { %v640_v30 = vpop.f32.mrb[6].mxu1 }
 0x105   : > { %1149 = vrot.lane.b32.xlu0 %v582_v20, %s2035_s20  ;;  %980 = vrot.lane.b32.xlu1 %v573_v24, %s2036_s21  ;;  %v1834_v31 = vpop.f32.mrb[7].mxu1  ;;  %v1960_v20 = vld [vmem:[%s2142_s15] sm:$0xff]  }
 0x106   : > { %1841 = vmatpush3.msk.msra.mxu1 %vm738_vm3, %v638_v28 }
 0x107   : > { %1850 = vmatprep.subr.mxu1 %v2028_v3 }
 0x109   : > { %1147 = vrot.lane.b32.xlu1 %v573_v24, %s2037_s24 }
 0x10d   : > { %902 = vrot.lane.b32.xlu1 %v638_v28, %s2034_s17 }
 0x16f   : > { %v816_v32 = vpop.permute.xlu1 %815  ;;  %v645_v33 = vpop.permute.xlu0 %644 }
 0x170   : > { %1836 = vmatpush3.xpose.msk.msra.mxu0 %vm646_vm4, %v645_v33 }
 0x171   : > { %1845 = vmatprep.subr.mxu0 %v2028_v3 }
 0x173   : > { %v814_v34 = vpop.permute.xlu1 %813  ;;  %1838 = vmatmul.mubr.msk.f32.vlgmr.msra.gmra.mrb[0].mxu0 %vm646_vm4, %v573_v24  ;;  %v983_v35 = vpop.permute.xlu0 %982  ;;  %v1961_v24 = vld [vmem:[%s2142_s15 + $0x8] sm:$0xff]   ;;  %s2040_s15 = smov 24  }
 0x174   : > { %1846 = vmatpush3.xpose.msk.msra.mxu0 %vm646_vm4, %v816_v32  ;;  %1847 = vmatprep.mubr.msk.f32.mxu0 %vm2029_vm1, %v2028_v3 }
 0x175   : > { %1855 = vmatprep.subr.mxu0 %v2028_v3 }
 0x177   : > { %1848 = vmatmul.mubr.msk.f32.vlgmr.msra.gmra.mrb[2].mxu0 %vm646_vm4, %v814_v34  ;;  %v981_v36 = vpop.permute.xlu1 %980  ;;  %v1150_v37 = vpop.permute.xlu0 %1149 }
 0x178   : > { %1856 = vmatpush3.xpose.msk.msra.mxu0 %vm646_vm4, %v983_v35  ;;  %1857 = vmatprep.mubr.msk.f32.mxu0 %vm2029_vm1, %v2028_v3 }
 0x179   : > { %1865 = vmatprep.subr.mxu0 %v2028_v3 }
 0x17b   : > { %1858 = vmatmul.mubr.msk.f32.vlgmr.msra.gmra.mrb[4].mxu0 %vm646_vm4, %v981_v36  ;;  %v1148_v38 = vpop.permute.xlu1 %1147 }
 0x17c   : > { %1866 = vmatpush3.xpose.msk.msra.mxu0 %vm646_vm4, %v1150_v37  ;;  %1867 = vmatprep.mubr.msk.f32.mxu0 %vm2029_vm1, %v2028_v3 }
 0x17d   : > { %1875 = vmatprep.subr.bf16.mxu0 %v2028_v3 }
 0x17f   : > { %1868 = vmatmul.mubr.msk.f32.vlgmr.msra.gmra.mrb[6].mxu0 %vm646_vm4, %v1148_v38  ;;  %v903_v55 = vpop.permute.xlu1 %902 }
 0x180   : > { %1879 = vmatprep.mubr.msk.bf16.mxu0 %vm2029_vm1, %v2028_v3  ;;  %1876 = vmatpush3.bf16.msra.mxu0 %v1960_v20 }
 0x181   : > { %1877 = vmatprep.subr.bf16.mxu0 %v2028_v3 }
 0x184   : > { %1878 = vmatpush3.bf16.msra.mxu0 %v1961_v24 }
 0x185   : > { %1891 = vmatprep.subr.bf16.mxu0 %v2028_v3 }
 0x246   : > { %v718_v39 = vpop.f32.mrb[0].mxu0 }
 0x247   : > { %v722_v40 = vmul.f32 0.35355338, %v718_v39  ;;  %v1839_v41 = vpop.f32.mrb[1].mxu0 }
 0x249   : > { %v724_v42 = vsel %vm723_vm5, %v722_v40, -inf }
 0x24a   : > { %725 = vmax.xlane.f32.xlu0 %v724_v42  ;;  %v887_v43 = vpop.f32.mrb[2].mxu0 }
 0x24b   : > { %v891_v44 = vmul.f32 0.35355338, %v887_v43  ;;  %v1849_v45 = vpop.f32.mrb[3].mxu0 }
 0x24d   : > { %v892_v46 = vsel %vm723_vm5, %v891_v44, -inf }
 0x24e   : > { %v1054_v47 = vpop.f32.mrb[4].mxu0  ;;  %893 = vmax.xlane.f32.xlu1 %v892_v46 }
 0x24f   : > { %v1058_v48 = vmul.f32 0.35355338, %v1054_v47  ;;  %v1859_v49 = vpop.f32.mrb[5].mxu0  ;;  %v1334_v47 = vsub.s32 3, %v2186_v9 }
 0x251   : > { %v1059_v50 = vsel %vm723_vm5, %v1058_v48, -inf }
 0x252   : > { %1060 = vmax.xlane.f32.xlu0 %v1059_v50  ;;  %v1221_v51 = vpop.f32.mrb[6].mxu0 }
 0x253   : > { %v1225_v52 = vmul.f32 0.35355338, %v1221_v51  ;;  %v1869_v53 = vpop.f32.mrb[7].mxu0 }
 0x255   : > { %v1226_v54 = vsel %vm723_vm5, %v1225_v52, -inf }
 0x256   : > { %1227 = vmax.xlane.f32.xlu0 %v1226_v54 }
 0x25f   : > { %1236 = vrot.lane.b32.xlu1 %v638_v28, %s2037_s24 }
 0x26c   : > { %1069 = vrot.lane.b32.xlu0 %v638_v28, %s2036_s21 }
 0x2d7   : > { %v726_v56 = vpop.xlane.xlu0 %725 }
 0x2d8   : > { %v727_v57 = vsub.f32 %v722_v40, %v726_v56 }
 0x2da   : > { %v728_v58 = vmul.f32 1.442695, %v727_v57 }
 0x2db   : > { %v894_v59 = vpop.xlane.xlu1 %893 }
 0x2dc   : > { %1968 = vpow2.f32 %v728_v58  ;;  %v895_v60 = vsub.f32 %v891_v44, %v894_v59 }
 0x2de   : > { %v896_v61 = vmul.f32 1.442695, %v895_v60 }
 0x2df   : > { %v1061_v62 = vpop.xlane.xlu0 %1060  ;;  %v1237_v13 = vpop.permute.xlu1 %1236 }
 0x2e0   : > { %1970 = vpow2.f32 %v896_v61  ;;  %v1062_v63 = vsub.f32 %v1058_v48, %v1061_v62  ;;  %v1335_v48 = vrot.slane %v2184_v8, %v1334_v47  ;;  %v1962_v61 = vld [vmem:[%s2147_s18] sm:$0xff]   ;;  %v1963_v62 = vld [vmem:[%s2147_s18 + $0x8] sm:$0xff]  }
 0x2e2   : > { %v1063_v0 = vmul.f32 1.442695, %v1062_v63  ;;  %v1964_v63 = vld [vmem:[%s2158_s26] sm:$0xff]  }
 0x2e3   : > { %v1228_v1 = vpop.xlane.xlu0 %1227 }
 0x2e4   : > { %1972 = vpow2.f32 %v1063_v0  ;;  %v1229_v2 = vsub.f32 %v1225_v52, %v1228_v1 }
 0x2e6   : > { %v1969_v4 = vpop.eup %1968  ;;  %v1230_v6 = vmul.f32 1.442695, %v1229_v2 }
 0x2e7   : > { %1843 = vmatmul.mubr.msk.f32.vlgmr.msra.gmra.mrb[8].mxu1 %vm734_vm6, %v1969_v4  ;;  %v1070_v10 = vpop.permute.xlu0 %1069  ;;  %v730_v15 = vsel %vm723_vm5, %v1969_v4, 0.0  ;;  %v1409_v4 = vsub.s32 5, %v2186_v9 }
 0x2e8   : > { %1974 = vpow2.f32 %v1230_v6  ;;  %1851 = vmatpush3.msk.msra.mxu1 %vm738_vm3, %v903_v55  ;;  %1852 = vmatprep.mubr.msk.f32.mxu1 %vm2029_vm1, %v2028_v3  ;;  %v1414_v6 = vsub.s32 6, %v2186_v9 }
 0x2e9   : > { %1860 = vmatprep.subr.mxu1 %v2028_v3 }
 0x2ea   : > { %v1971_v7 = vpop.eup %1970 }
 0x2eb   : > { %1853 = vmatmul.mubr.msk.f32.vlgmr.msra.gmra.mrb[10].mxu1 %vm734_vm6, %v1971_v7  ;;  %v898_v11 = vsel %vm723_vm5, %v1971_v7, 0.0  ;;  %v1410_v7 = vrot.slane %v2184_v8, %v1409_v4 }
 0x2ec   : > { %1861 = vmatpush3.msk.msra.mxu1 %vm738_vm3, %v1070_v10  ;;  %899 = vadd.xlane.f32.xlu1 %v898_v11 }
 0x2ed   : > { %1862 = vmatprep.mubr.msk.f32.mxu1 %vm2029_vm1, %v2028_v3  ;;  %1870 = vmatprep.subr.mxu1 %v2028_v3 }
 0x2ee   : > { %v1973_v12 = vpop.eup %1972 }
 0x2ef   : > { %1863 = vmatmul.mubr.msk.f32.vlgmr.msra.gmra.mrb[12].mxu1 %vm734_vm6, %v1973_v12  ;;  %v1065_v14 = vsel %vm723_vm5, %v1973_v12, 0.0  ;;  %v1415_v12 = vrot.slane %v2184_v8, %v1414_v6 }
 0x2f0   : > { %1871 = vmatpush3.msk.msra.mxu1 %vm738_vm3, %v1237_v13  ;;  %1066 = vadd.xlane.f32.xlu0 %v1065_v14 }
 0x2f1   : > { %731 = vadd.xlane.f32.xlu1 %v730_v15  ;;  %1872 = vmatprep.mubr.msk.f32.mxu1 %vm2029_vm1, %v2028_v3 }
 0x2f2   : > { %v1975_v16 = vpop.eup %1974  ;;  %1883 = vmatprep.subr.bf16.mxu1 %v2028_v3 }
 0x2f3   : > { %1873 = vmatmul.mubr.msk.f32.vlgmr.msra.gmra.mrb[14].mxu1 %vm734_vm6, %v1975_v16  ;;  %v1232_v17 = vsel %vm723_vm5, %v1975_v16, 0.0  ;;  %v1966_v16 = vld [vmem:[%s2158_s26 + $0x10] sm:$0xff]  }
 0x2f4   : > { %1233 = vadd.xlane.f32.xlu0 %v1232_v17  ;;  %1887 = vmatprep.mubr.msk.bf16.mxu1 %vm2029_vm1, %v2028_v3  ;;  %v1967_v17 = vld [vmem:[%s2158_s26 + $0x18] sm:$0xff]  }
 0x2f5   : > { %1884 = vmatpush3.bf16.msra.mxu1 %v1962_v61 }
 0x2f6   : > { %1885 = vmatprep.subr.bf16.mxu1 %v2028_v3 }
 0x2f9   : > { %1886 = vmatpush3.bf16.msra.mxu1 %v1963_v62 }
 0x379   : > { %v900_v18 = vpop.xlane.xlu1 %899 }
 0x37a   : > { %1976 = vrcp.f32 %v900_v18  ;;  %v1768_v18 = vld [vmem:[%s469_s29] ss:$0 sm:$0xff] }
 0x37d   : > { %v1067_v19 = vpop.xlane.xlu0 %1066 }
 0x37e   : > { %1978 = vrcp.f32 %v1067_v19  ;;  %v732_v37 = vpop.xlane.xlu1 %731 }
 0x381   : > { %v1234_v21 = vpop.xlane.xlu0 %1233 }
 0x382   : > { %1980 = vrcp.f32 %v1234_v21 }
 0x383   : > { %1982 = vrcp.f32 %v732_v37 }
 0x384   : > { %v1977_v25 = vpop.eup %1976 }
 0x388   : > { %v1979_v29 = vpop.eup %1978 }
 0x38c   : > { %v1981_v33 = vpop.eup %1980 }
 0x38d   : > { %v1983_v38 = vpop.eup %1982 }
 0x3ba   : > { %v808_v22 = vpop.f32.mrb[8].mxu1 }
 0x3bb   : > { %v1844_v23 = vpop.f32.mrb[9].mxu1  ;;  %v812_v41 = vmul.f32 %v1983_v38, %v808_v22 }
 0x3be   : > { %v975_v26 = vpop.f32.mrb[10].mxu1 }
 0x3bf   : > { %v979_v27 = vmul.f32 %v1977_v25, %v975_v26  ;;  %v1854_v28 = vpop.f32.mrb[11].mxu1  ;;  %v1483_v26 = vsub.s32 4, %v2186_v9 }
 0x3c1   : > { %1315 = vrot.lane.b32.xlu0 %v979_v27, %s2038_s27 }
 0x3c2   : > { %v1142_v30 = vpop.f32.mrb[12].mxu1 }
 0x3c3   : > { %v1146_v31 = vmul.f32 %v1979_v29, %v1142_v30  ;;  %v1864_v32 = vpop.f32.mrb[13].mxu1 }
 0x3c5   : > { %1319 = vrot.lane.b32.xlu1 %v1146_v31, %s2039_s10 }
 0x3c6   : > { %v1309_v34 = vpop.f32.mrb[14].mxu1 }
 0x3c7   : > { %v1313_v35 = vmul.f32 %v1981_v33, %v1309_v34  ;;  %v1874_v36 = vpop.f32.mrb[15].mxu1 }
 0x3c9   : > { %1323 = vrot.lane.b32.xlu1 %v1313_v35, %s2040_s15 }
 0x433   : > { %v1316_v39 = vpop.permute.xlu0 %1315 }
 0x434   : > { %v1326_v42 = vsel %vm646_vm4, %v812_v41, %v1316_v39 }
 0x437   : > { %v1320_v40 = vpop.permute.xlu1 %1319 }
 0x438   : > { %v1328_v43 = vsel %vm1327_vm7, %v1326_v42, %v1320_v40  ;;  %v1569_v42 = vsub.s32 7, %v2186_v9 }
 0x43b   : > { %v1324_v44 = vpop.permute.xlu1 %1323 }
 0x43c   : > { %v1330_v45 = vsel %vm1329_vm8, %v1328_v43, %v1324_v44  ;;  %v1570_v43 = vrot.slane %v2184_v8, %v1569_v42 }
 0x43d   : > { %v1331_v46 = vpack.c.bf16 %v1330_v45, %v1330_v45 }
 0x43f   : > { %1880 = vmatmul.mubr.msk.bf16.vlgmr.msra.gmra.mrb[8].mxu0 %vm525_vm2, %v1331_v46  ;;  %v1777_v46 = vld [vmem:[%s2153_s22 + $0x8] ss:$0 sm:$0xff] }
 0x440   : > { %1899 = vmatprep.mubr.msk.bf16.mxu0 %vm2029_vm1, %v2028_v3  ;;  %1892 = vmatpush3.bf16.msra.mxu0 %v1964_v63 }
 0x441   : > { %1893 = vmatprep.subr.bf16.mxu0 %v2028_v3 }
 0x512   : > { %v1385_v49 = vpop.f32.mrb[8].mxu0 }
 0x513   : > { %v1386_v50 = vadd.f32 %v1385_v49, %v1335_v48  ;;  %v1881_v51 = vpop.f32.mrb[9].mxu0 }
 0x514   : > { %v1388_v52 = vpop.f32.mrb[10].mxu0 }
 0x515   : > { %v1882_v53 = vpop.f32.mrb[11].mxu0  ;;  %v1391_v54 = vadd.f32 %v1386_v50, %v2176_v5  ;;  %v1965_v5 = vld [vmem:[%s2158_s26 + $0x8] sm:$0xff]  }
 0x516   : > { %1894 = vmatpush3.bf16.msra.mxu0 %v1965_v5 }
 0x517   : > { %v1393_v55 = vsel %vm1392_vm9, %v1391_v54, 0.0  ;;  %1895 = vmatprep.subr.bf16.mxu0 %v2028_v3 }
 0x518   : > { %1394 = vadd.xlane.f32.xlu0 %v1393_v55 }
 0x51a   : > { %1896 = vmatpush3.bf16.msra.mxu0 %v1966_v16 }
 0x51b   : > { %1897 = vmatprep.subr.bf16.mxu0 %v2028_v3  ;;  %v1484_v3 = vrot.slane %v2184_v8, %v1483_v26 }
 0x51e   : > { %1898 = vmatpush3.bf16.msra.mxu0 %v1967_v17 }
 0x5a5   : > { %v1395_v56 = vpop.xlane.xlu0 %1394 }
 0x5a6   : > { %v1397_v57 = vmul.f32 0.03125, %v1395_v56 }
 0x5a8   : > { %v1398_v58 = vsub.f32 %v1391_v54, %v1397_v57 }
 0x5aa   : > { %v1399_v59 = vmul.f32 %v1398_v58, %v1398_v58 }
 0x5ac   : > { %v1400_v60 = vsel %vm1392_vm9, %v1399_v59, 0.0 }
 0x5ad   : > { %1401 = vadd.xlane.f32.xlu1 %v1400_v60 }
 0x63a   : > { %v1402_v0 = vpop.xlane.xlu1 %1401 }
 0x63b   : > { %v1403_v1 = vmul.f32 0.03125, %v1402_v0 }
 0x63d   : > { %v1404_v2 = vadd.f32 1e-05, %v1403_v1 }
 0x63f   : > { %1984 = vrsqrt.f32 %v1404_v2 }
 0x649   : > { %v1985_v10 = vpop.eup %1984 }
 0x64a   : > { %v1406_v11 = vmul.f32 %v1985_v10, %v1398_v58 }
 0x64c   : > { %v1411_v13 = vmul.f32 %v1410_v7, %v1406_v11 }
 0x64e   : > { %v1416_v14 = vadd.f32 %v1415_v12, %v1411_v13 }
 0x650   : > { %v1417_v15 = vpack.c.bf16 %v1416_v14, %v1416_v14 }
 0x652   : > { %1888 = vmatmul.mubr.msk.bf16.vlgmr.msra.gmra.mrb[16].mxu1 %vm525_vm2, %v1417_v15 }
 0x725   : > { %v1473_v19 = vpop.f32.mrb[16].mxu1 }
 0x726   : > { %v1474_v20 = vadd.f32 %v1768_v18, %v1473_v19  ;;  %v1889_v21 = vpop.f32.mrb[17].mxu1 }
 0x727   : > { %v1476_v22 = vpop.f32.mrb[18].mxu1 }
 0x728   : > { %v1479_v23 = vmax.f32 %v1474_v20, 0.0  ;;  %v1890_v24 = vpop.f32.mrb[19].mxu1 }
 0x72a   : > { %v1480_v25 = vpack.c.bf16 %v1479_v23, %v1479_v23 }
 0x72c   : > { %1900 = vmatmul.mubr.msk.bf16.vlgmr.msra.gmra.mrb[12].mxu0 %vm1509_vm10, %v1480_v25 }
 0x7ff   : > { %v1547_v27 = vpop.f32.mrb[12].mxu0 }
 0x800   : > { %v1548_v28 = vadd.f32 %v1547_v27, %v1484_v3  ;;  %v1901_v29 = vpop.f32.mrb[13].mxu0 }
 0x801   : > { %v1550_v30 = vpop.f32.mrb[14].mxu0 }
 0x802   : > { %v1902_v31 = vpop.f32.mrb[15].mxu0  ;;  %v1553_v32 = vadd.f32 %v1548_v28, %v1416_v14 }
 0x804   : > { %v1554_v33 = vsel %vm1392_vm9, %v1553_v32, 0.0 }
 0x805   : > { %1555 = vadd.xlane.f32.xlu0 %v1554_v33 }
 0x892   : > { %v1556_v34 = vpop.xlane.xlu0 %1555 }
 0x893   : > { %v1557_v35 = vmul.f32 0.03125, %v1556_v34 }
 0x895   : > { %v1558_v36 = vsub.f32 %v1553_v32, %v1557_v35 }
 0x897   : > { %v1559_v37 = vmul.f32 %v1558_v36, %v1558_v36 }
 0x899   : > { %v1560_v38 = vsel %vm1392_vm9, %v1559_v37, 0.0 }
 0x89a   : > { %1561 = vadd.xlane.f32.xlu0 %v1560_v38 }
 0x927   : > { %v1562_v39 = vpop.xlane.xlu0 %1561 }
 0x928   : > { %v1563_v40 = vmul.f32 0.03125, %v1562_v39 }
 0x92a   : > { %v1564_v41 = vadd.f32 1e-05, %v1563_v40 }
 0x92c   : > { %1986 = vrsqrt.f32 %v1564_v41 }
 0x936   : > { %v1987_v44 = vpop.eup %1986 }
 0x937   : > { %v1566_v45 = vmul.f32 %v1987_v44, %v1558_v36 }
 0x939   : > { %v1571_v47 = vmul.f32 %v1570_v43, %v1566_v45 }
 0x93b   : > { %v1576_v48 = vadd.f32 %v1777_v46, %v1571_v47 }
 0x93d   : > { %1577 = vst.msk [vmem:[%s2167_s14] sm:$0xf] %vm1392_vm9, %v1576_v48 }
 0x93e PF: > { %s19_s13 = sadd.s32 1, %s2026_s13   ;;  %s2340_s10 = sld [smem:[#allocation2_spill]] }
 0x93f   : > { %p16_p8 = scmp.ge.s32.totalorder %s19_s13, 8   ;;  %s2341_s16 = sld [smem:[#allocation3_spill]] }
 0x940   : > { %s2342_s12 = sld [smem:[#allocation4_spill]]  ;;  %s2343_s30 = smov %s2018_s11 }
 0x941   :  { %18 = sbr.rel (!%p16_p8) target bundleno = 5 (0x5), region = 111 }
 0x945   : > { %s2344_s11 = smov %s2341_s16 }

</bundles_post_ra>
